<compile_context>
chip_gen: v6e
topology: v6e:2x2x1
jax: 0.10.0
libtpu: 0.0.40
codegen_flags: <defaults>
</compile_context>

<pallas_src>
import functools

import jax
import jax.numpy as jnp
from jax.experimental import pallas as pl
from jax.experimental.pallas import tpu as pltpu


def _round_up(x: int, m: int) -> int:
    return ((x + m - 1) // m) * m


def _pick_tile(requested: int, dim: int, granule: int) -> int:
    """Tile size: a multiple of `granule`, or the full dim when it is small."""
    if dim <= granule:
        return dim  # full-dim block (allowed even if not granule-aligned)
    return max(granule, _round_up(min(requested, dim), granule))


def _vmem_limit_bytes() -> int:
    """Per-generation scoped-VMEM request (v5e/v6e: 128 MiB phys, v7x: 64 MiB/TC)."""
    try:
        cap = int(pltpu.get_tpu_info().vmem_capacity_bytes)
    except Exception:  # unknown chip / interpret mode -> conservative
        cap = 0
    if cap >= 128 * 1024 * 1024:
        return 96 * 1024 * 1024
    return 32 * 1024 * 1024


def _affine_kernel(phi_ref, w_ref, b_ref, out_ref, *, compute_dtype):
    """One (tm, tn) output tile; the K reduction runs over grid axis 2.

    The f32 out block is resident across k (its index_map ignores k), so it
    doubles as the accumulator: bias-init at k == 0, then a pure MXU
    accumulate every step.  batch/embed edge tiles rely on Pallas' masked
    stores; the K dim is zero-padded by the wrapper when ragged.
    """

    @pl.when(pl.program_id(2) == 0)
    def _init():
        out_ref[...] = jnp.broadcast_to(b_ref[...], out_ref.shape)

    out_ref[...] += jnp.dot(
        phi_ref[...].astype(compute_dtype),
        w_ref[...].astype(compute_dtype),
        preferred_element_type=jnp.float32,
    )


def base_emulator_forward(
    phi,
    w,
    b,
    *,
    tm: int = 512,
    tn: int = 512,
    tk: int = 2048,
    compute_dtype=jnp.bfloat16,
    min_flops_for_pallas: int = 1 << 27,  # ~1.3e8 FLOPs
):
    """emb = phi @ W + b.

    phi: [B, n_params]   w: [n_params, embedding_dim]
    b:   [embedding_dim] or [1, embedding_dim]
    Returns [B, embedding_dim] float32 (bf16 MXU compute, f32 accumulation).
    """
    batch, n_params = phi.shape
    n_params_w, embed = w.shape
    assert n_params_w == n_params, "phi / W contraction dims must match"
    b2 = jnp.asarray(b, jnp.float32).reshape(1, embed)

    # Tiny problems: per-grid-step (~0.35 us) + custom-call launch overhead
    # dwarfs the compute -- let XLA fuse a plain matmul.  Same compute dtype
    # as the kernel so numerics are continuous across the threshold.
    if 2 * batch * n_params * embed < min_flops_for_pallas:
        return (
            jnp.dot(
                phi.astype(compute_dtype),
                w.astype(compute_dtype),
                preferred_element_type=jnp.float32,
            )
            + b2
        )

    # ---------------- tile selection -----------------------------------
    tm = _pick_tile(tm, batch, 8)
    tn = _pick_tile(tn, embed, 128)
    tk = _pick_tile(tk, n_params, 128)

    # Shrink tiles until the double-buffered working set fits this
    # generation's scoped-VMEM budget (leave ~15% headroom for the compiler).
    vmem_limit = _vmem_limit_bytes()
    budget = int(vmem_limit * 0.85)
    phi_isz = jnp.dtype(phi.dtype).itemsize
    w_isz = jnp.dtype(w.dtype).itemsize

    def working_set(tm_, tn_, tk_):
        return (
            2 * tm_ * tk_ * phi_isz   # phi tile, double-buffered
            + 2 * tk_ * tn_ * w_isz   # W tile, double-buffered
            + 2 * tm_ * tn_ * 4       # resident f32 output/accumulator
            + 2 * tn_ * 4             # bias tile
        )

    while working_set(tm, tn, tk) > budget and tk > 512:
        tk = max(512, _round_up(tk // 2, 128))
    while working_set(tm, tn, tk) > budget and (tm > 256 or tn > 256):
        if tn >= tm and tn > 256:
            tn = max(256, _round_up(tn // 2, 128))
        else:
            tm = max(256, _round_up(tm // 2, 8))

    # Keep >= 2 (batch, embed) tiles when possible so both TensorCores get
    # work on v7x; costs at most one extra grid step on single-TC gens.
    if pl.cdiv(batch, tm) * pl.cdiv(embed, tn) < 2:
        if embed > 128 and tn > 128:
            tn = max(128, _round_up(pl.cdiv(embed, 2), 128))
        elif batch > 8 and tm > 8:
            tm = max(8, _round_up(pl.cdiv(batch, 2), 8))

    # ---- only the K (contraction) dim ever needs zero padding ----------
    # (garbage in the batch/embed edge tiles only lands in rows/cols that are
    # masked on store; garbage along K would corrupt valid outputs).
    kp = _round_up(n_params, tk)
    phi_in, w_in = phi, w
    if kp != n_params:
        phi_in = jnp.pad(phi, ((0, 0), (0, kp - n_params)))
        w_in = jnp.pad(w, ((0, kp - n_params), (0, 0)))

    grid = (pl.cdiv(batch, tm), pl.cdiv(embed, tn), kp // tk)

    cost = pl.CostEstimate(
        flops=2 * batch * kp * embed,
        transcendentals=0,
        bytes_accessed=(
            batch * kp * phi_isz * grid[1]     # phi re-streamed per embed tile
            + kp * embed * w_isz * grid[0]     # W re-streamed per batch tile
            + embed * 4 * grid[0]              # bias
            + batch * embed * 4                # output
        ),
    )

    kernel = functools.partial(_affine_kernel, compute_dtype=compute_dtype)

    # TODO(synk): for tiny per-step tiles on v7x, pipeline_mode=pl.Buffered(3)
    # on the W BlockSpec would hide the exposed DMA latency.
    return pl.pallas_call(
        kernel,
        out_shape=jax.ShapeDtypeStruct((batch, embed), jnp.float32),
        grid_spec=pltpu.PrefetchScalarGridSpec(
            num_scalar_prefetch=0,
            grid=grid,
            in_specs=[
                # phi tile follows (batch, k)
                pl.BlockSpec((tm, tk), lambda i, j, k: (i, k)),
                # W tile follows (k, embed)
                pl.BlockSpec((tk, tn), lambda i, j, k: (k, j)),
                # bias tile: resident across i and k, re-fetched only when j changes
                pl.BlockSpec((1, tn), lambda i, j, k: (0, j)),
            ],
            out_specs=pl.BlockSpec((tm, tn), lambda i, j, k: (i, j)),
        ),
        compiler_params=pltpu.CompilerParams(
            # batch & embed tiles are independent -> megacore-shardable (v7x);
            # K carries the accumulation in the resident out block -> arbitrary.
            dimension_semantics=("parallel", "parallel", "arbitrary"),
            vmem_limit_bytes=vmem_limit,
        ),
        cost_estimate=cost,
    )(phi_in, w_in, b2)


if __name__ == "__main__":
    root = jax.random.PRNGKey(0)
    k_tiny, k_ragged, k_mod = jax.random.split(root, 3)

    def make_inputs(key, batch, n_params, embed):
        k_phi, k_w, k_b = jax.random.split(key, 3)
        phi = jax.random.normal(k_phi, (batch, n_params), dtype=jnp.float32)
        # Deterministic "parameter init" (Xavier-like scale), no checkpoint load.
        w = jax.random.normal(k_w, (n_params, embed), dtype=jnp.float32) * (
            1.0 / jnp.sqrt(n_params)
        )
        b = jax.random.normal(k_b, (1, embed), dtype=jnp.float32) * 0.01
        return phi, w, b

    # 1) Demo-scale shapes (8 x 16 @ 16 x 32): small-shape fast path.
    phi, w, b = make_inputs(k_tiny, 8, 16, 32)
    ref = phi @ w + b
    out = jax.block_until_ready(base_emulator_forward(phi, w, b))
    assert out.shape == (8, 32)
    assert jnp.allclose(out, ref, atol=3e-2, rtol=3e-2)

    # 2) Same tiny shapes forced through the Pallas path: full-dim blocks,
    #    single grid step, bias-folded init.
    out_p = jax.block_until_ready(
        base_emulator_forward(phi, w, b, min_flops_for_pallas=0)
    )
    assert out_p.shape == (8, 32)
    assert jnp.allclose(out_p, ref, atol=3e-2, rtol=3e-2)

    # 3) Ragged shapes (200 x 300 @ 300 x 260) with small tiles: exercises
    #    partial batch/embed edge tiles (masked stores), K-only zero padding,
    #    and the multi-step K accumulation into the resident out block.
    phi, w, b = make_inputs(k_ragged, 200, 300, 260)
    ref = phi @ w + b
    out = jax.block_until_ready(
        base_emulator_forward(
            phi, w, b, tm=128, tn=128, tk=128, min_flops_for_pallas=0
        )
    )
    assert out.shape == (200, 260)
    assert jnp.allclose(out, ref, atol=5e-2, rtol=5e-2)

    # 4) Moderate shapes with the default (large) tiles: exercises the
    #    VMEM-budget clamp and the >=2-parallel-tile guard (grid (1, 2, 1)).
    phi, w, b = make_inputs(k_mod, 256, 512, 512)
    ref = phi @ w + b
    out = jax.block_until_ready(
        base_emulator_forward(phi, w, b, min_flops_for_pallas=0)
    )
    assert out.shape == (256, 512)
    assert jnp.allclose(out, ref, atol=5e-2, rtol=5e-2)

    print("KERNEL_OK")
</pallas_src>

<mosaic_0001>
module attributes {stable_mosaic.version = 11 : i64} {
  func.func @_affine_kernel(%arg0: i32, %arg1: i32, %arg2: i32, %arg3: memref<8x16xf32, #tpu.memory_space<vmem>>, %arg4: memref<16x32xf32, #tpu.memory_space<vmem>>, %arg5: memref<1x32xf32, #tpu.memory_space<vmem>>, %arg6: memref<8x32xf32, #tpu.memory_space<vmem>>) attributes {dimension_semantics = [#tpu.dimension_semantics<parallel>, #tpu.dimension_semantics<parallel>, #tpu.dimension_semantics<arbitrary>], iteration_bounds = array<i64: 1, 1, 1>, scalar_prefetch = 0 : i64, scratch_operands = 0 : i64, tpu.core_type = #tpu.core_type<tc>, window_params = [{transform_indices = @transform_0, window_bounds = array<i64: 8, 16>}, {transform_indices = @transform_1, window_bounds = array<i64: 16, 32>}, {transform_indices = @transform_2, window_bounds = array<i64: 1, 32>}, {transform_indices = @transform_3, window_bounds = array<i64: 8, 32>}]} {
    %c0_i32 = arith.constant 0 : i32
    %0 = arith.cmpi eq, %arg2, %c0_i32 : i32
    %1 = arith.extui %0 : i1 to i32
    %c0_i32_0 = arith.constant 0 : i32
    %2 = arith.cmpi ne, %1, %c0_i32_0 : i32
    scf.if %2 {
      %c0_8 = arith.constant 0 : index
      %c0_9 = arith.constant 0 : index
      %11 = vector.load %arg5[%c0_8, %c0_9] : memref<1x32xf32, #tpu.memory_space<vmem>>, vector<1x32xf32>
      %12 = vector.shape_cast %11 : vector<1x32xf32> to vector<1x32xf32>
      %13 = vector.broadcast %12 : vector<1x32xf32> to vector<8x32xf32>
      %c0_10 = arith.constant 0 : index
      %c0_11 = arith.constant 0 : index
      %14 = vector.load %arg6[%c0_10, %c0_11] : memref<8x32xf32, #tpu.memory_space<vmem>>, vector<8x32xf32>
      tpu.vector_store %arg6[%c0_10, %c0_11], %13 {strides = array<i32>} : memref<8x32xf32, #tpu.memory_space<vmem>>, vector<8x32xf32>,
    } else {
    }
    %c0 = arith.constant 0 : index
    %c0_1 = arith.constant 0 : index
    %3 = vector.load %arg6[%c0, %c0_1] : memref<8x32xf32, #tpu.memory_space<vmem>>, vector<8x32xf32>
    %c0_2 = arith.constant 0 : index
    %c0_3 = arith.constant 0 : index
    %4 = vector.load %arg3[%c0_2, %c0_3] : memref<8x16xf32, #tpu.memory_space<vmem>>, vector<8x16xf32>
    %5 = arith.truncf %4 : vector<8x16xf32> to vector<8x16xbf16>
    %c0_4 = arith.constant 0 : index
    %c0_5 = arith.constant 0 : index
    %6 = vector.load %arg4[%c0_4, %c0_5] : memref<16x32xf32, #tpu.memory_space<vmem>>, vector<16x32xf32>
    %7 = arith.truncf %6 : vector<16x32xf32> to vector<16x32xbf16>
    %cst = arith.constant dense<0.000000e+00> : vector<8x32xf32>
    %8 = tpu.matmul %5, %7, %cst {dimension_numbers = #tpu.dot_dimension_numbers<[1], [0], [0], [1], [0, 0, 1, 1], [], []>} : vector<8x16xbf16>, vector<16x32xbf16>, vector<8x32xf32> -> vector<8x32xf32>
    %9 = arith.addf %3, %8 : vector<8x32xf32>
    %c0_6 = arith.constant 0 : index
    %c0_7 = arith.constant 0 : index
    %10 = vector.load %arg6[%c0_6, %c0_7] : memref<8x32xf32, #tpu.memory_space<vmem>>, vector<8x32xf32>
    tpu.vector_store %arg6[%c0_6, %c0_7], %9 {strides = array<i32>} : memref<8x32xf32, #tpu.memory_space<vmem>>, vector<8x32xf32>,
    return
  }
  func.func @transform_0(%arg0: i32, %arg1: i32, %arg2: i32) -> (i32, i32) {
    %c0_i32 = arith.constant 0 : i32
    return %arg0, %arg2 : i32, i32
  }
  func.func @transform_1(%arg0: i32, %arg1: i32, %arg2: i32) -> (i32, i32) {
    %c0_i32 = arith.constant 0 : i32
    return %arg2, %arg1 : i32, i32
  }
  func.func @transform_2(%arg0: i32, %arg1: i32, %arg2: i32) -> (i32, i32) {
    %c0_i32 = arith.constant 0 : i32
    %c0_i32_0 = arith.constant 0 : i32
    return %c0_i32, %arg1 : i32, i32
  }
  func.func @transform_3(%arg0: i32, %arg1: i32, %arg2: i32) -> (i32, i32) {
    %c0_i32 = arith.constant 0 : i32
    return %arg0, %arg1 : i32, i32
  }
}

</mosaic_0001>

<bundles_post_ra>
// kernel: tpu_custom_call.1
= control target key start
LH: loop header
LB: loop body
LE: loop exit
PB: predicated region body
PF: predicated region fallthrough
CT: control target
= control target key end

     0   :  { %8 = vsyncpa [#allocation3], 0  ;;  %s248_s0 = inlined_call_operand.hbm [shape: f32[8,16], index: 0, kind: input, shape index: {}]   ;;  %s249_s1 = inlined_call_operand.hbm [shape: f32[16,32], index: 1, kind: input, shape index: {}]   ;;  %s250_s2 = inlined_call_operand.vmem [shape: f32[1,32], index: 2, kind: input, shape index: {}]   ;;  %s251_s3 = inlined_call_operand.hbm [shape: f32[8,32], index: 3, kind: output, shape index: {}]  }
   0x1   :  { %9 = vsyncpa [#allocation6], 0 }
   0x2   :  { %10 = vsyncpa [#allocation4], 0  ;;  %s207_s12 = smov [#allocation2]   ;;  %s208_s14 = smov [#allocation5]  }
   0x3   :  { %s17_s13 = sshll.u32 %s207_s12, 4  ;;  %s26_s15 = sshll.u32 %s208_s14, 4  ;;  %s18_s13 = int_to_ptr.vmem [resolvable:$true] %s17_s13  ;;  %s27_s15 = int_to_ptr.vmem [resolvable:$true] %s26_s15 }
   0x4   :  { %s149_s16 = scalar_lea.vmem %s18_s13, 128  ;;  %p154_p1 = scmp.lt.s32.totalorder %s18_s13, %s18_s13 }
   0x5   :  { %p150_p0 = scmp.ne.s32.totalorder %s18_s13, %s149_s16  ;;  %p155_p2 = scmp.lt.s32.totalorder %s149_s16, %s149_s16 }
   0x7   :  { %p156_p3 = por %p155_p2, %p154_p1 }
   0x9   :  { %p157_p4 = pnand %p156_p3, %p150_p0 }
   0xb   :  { %160 = shalt.err (!%p157_p4)
}
   0xc   :  { %20 = dma.hbm_to_vmem [thread:$0]  %s248_s0, 128, %s18_s13, [#allocation3]  }
   0xd   :  { %s169_s19 = scalar_lea.vmem %s27_s15, 256  ;;  %p174_p6 = scmp.lt.s32.totalorder %s27_s15, %s27_s15 }
   0xe   :  { %p170_p5 = scmp.ne.s32.totalorder %s27_s15, %s169_s19  ;;  %p175_p7 = scmp.lt.s32.totalorder %s169_s19, %s169_s19 }
  0x10   :  { %p176_p8 = por %p175_p7, %p174_p6 }
  0x12   :  { %p177_p9 = pnand %p176_p8, %p170_p5 }
  0x14   :  { %180 = shalt.err (!%p177_p9)
}
  0x15   :  { %s209_s20 = smov 128   ;;  %s210_s21 = smov 8  }
  0x16   :  { %32 = dma.hbm_to_vmem [thread:$0]  %s249_s1, 256, %s27_s15, [#allocation6], %s209_s20, %s209_s20, %s210_s21  }
  0x17   :  { %201 = dma.done.wait [#allocation3], 128  }
  0x18   :  { %202 = vsyncadd [#allocation3], 4294967168 }
  0x19   :  { %203 = dma.done.wait [#allocation6], 256  }
  0x1a   :  { %204 = vsyncadd [#allocation6], 4294967040  ;;  %v211_v0 = vmov 0.0   ;;  %vm212_vm0 = vmmov 0   ;;  %vm53_vm1 = vcmask 261120   ;;  %v58_v2 = vld [vmem:[#allocation5] sm:$0xff] }
  0x1b   :  { %128 = vmatprep.subr.bf16.mxu0 %v211_v0  ;;  %130 = vmatprep.mubr.msk.bf16.mxu0 %vm212_vm0, %v211_v0  ;;  %v124_v1 = vld [vmem:[%s250_s2] ss:$0 sm:$0xff]  ;;  %v59_v3 = vld [vmem:[#allocation5 + $0x8] sm:$0xff]  ;;  %vm61_vm2 = vcmask 130048   ;;  %s213_s1 = smov [#allocation7]  }
  0x1c   :  { %54 = vst.msk [vmem:[#allocation7] sm:$0xff] %vm53_vm1, %v124_v1  ;;  %v60_v4 = vpack.c.bf16 %v59_v3, %v58_v2  ;;  %v56_v5 = vld [vmem:[#allocation2] sm:$0xff]  ;;  %s114_s25 = sshll.u32 %s213_s1, 4  ;;  %s115_s25 = int_to_ptr.vmem [resolvable:$true] %s114_s25 }
  0x1d   :  { %v57_v6 = vpack.c.bf16 %v56_v5, %v56_v5  ;;  %s181_s2 = scalar_lea.vmem %s115_s25, 128  ;;  %p186_p11 = scmp.lt.s32.totalorder %s115_s25, %s115_s25 }
  0x1e   :  { %129 = vmatpush3.bf16.msra.mxu0 %v60_v4  ;;  %p182_p10 = scmp.ne.s32.totalorder %s115_s25, %s181_s2  ;;  %p187_p12 = scmp.lt.s32.totalorder %s181_s2, %s181_s2 }
  0x20   :  { %p188_p13 = por %p187_p12, %p186_p11 }
  0x21   :  { %131 = vmatmul.mubr.msk.bf16.vlgmr.msra.gmra.mxu0 %vm61_vm2, %v57_v6 }
  0x22   :  { %p189_p0 = pnand %p188_p13, %p182_p10 }
  0x23   :  { %v55_v7 = vld [vmem:[#allocation7] sm:$0xff] }
  0xe1   :  { %v99_v8 = vpop.f32.mrf.mxu0 }
  0xe2   :  { %v105_v9 = vadd.f32 %v99_v8, %v55_v7 }
  0xe3   :  { %v132_v10 = vpop.f32.mrf.mxu0 }
  0xe4   :  { %107 = vst.msk [vmem:[#allocation7] sm:$0xff] %vm53_vm1, %v105_v9 }
  0xe5   :  { %v102_v11 = vpop.f32.mrf.mxu0 }
  0xe6   :  { %192 = shalt.err (!%p189_p0)
}
  0xe7   :  { %117 = dma.vmem_to_hbm [thread:$0]  %s115_s25, 128, %s251_s3, [#allocation4]   ;;  %v133_v12 = vpop.f32.mrf.mxu0 }
  0xe8   :  { %205 = dma.done.wait [#allocation4], 128  }
  0xe9   :  { %206 = vsyncadd [#allocation4], 4294967168 }
  0xea   :  { %121 = vsyncpa [#allocation3], 1 }
  0xeb   :  { %122 = vsyncpa [#allocation6], 1 }
  0xec   :  { %123 = vsyncpa [#allocation4], 1 }

</bundles_post_ra>
